<compile_context>
chip_gen: v5e
topology: v5e:2x2
jax: 0.10.0
libtpu: 0.0.40
codegen_flags: <defaults>
</compile_context>

<pallas_src>
import jax
import jax.numpy as jnp
from jax.experimental import pallas as pl
from jax.experimental.pallas import tpu as pltpu


def _mlp_kernel(x_ref, w1_ref, b1_ref, w2_ref, b2_ref, o_ref):
    # x_ref : (C_in, tHW)     w1_ref: (C_hid, C_in)   b1_ref: (C_hid, 1)
    # w2_ref: (C_out, C_hid)  b2_ref: (C_out, 1)      o_ref : (C_out, tHW)
    x = x_ref[...]
    h = jnp.dot(w1_ref[...], x, preferred_element_type=jnp.float32)
    h = h + b1_ref[...].astype(jnp.float32)
    h = jax.nn.gelu(h, approximate=True)          # tanh-GELU (see TODO above)
    y = jnp.dot(w2_ref[...], h.astype(w2_ref.dtype),
                preferred_element_type=jnp.float32)
    y = y + b2_ref[...].astype(jnp.float32)
    o_ref[...] = y.astype(o_ref.dtype)


def _pick_hw_tile(hw):
    # Lane-dense tiles: multiple of 128, as large as sensible for pipelining.
    for t in (2048, 1024, 512, 256, 128):
        if hw % t == 0:
            return t
    return hw  # full-dim block fallback (legal; masked stores if hw % 128 != 0)


def mlp_forward(x, w1, b1, w2, b2):
    """x: (B, C_in, H, W) NCHW.  w1: (C_hid, C_in), b1: (C_hid,),
    w2: (C_out, C_hid), b2: (C_out,).  Returns (B, C_out, H, W)."""
    B, C_in, H, W = x.shape
    C_hid = w1.shape[0]
    C_out = w2.shape[0]
    HW = H * W

    tHW = _pick_hw_tile(HW)
    grid = (B, HW // tHW)

    x_flat = x.reshape(B, C_in, HW)          # metadata-only reshape
    b1_col = b1.reshape(C_hid, 1)
    b2_col = b2.reshape(C_out, 1)

    itemsize = jnp.dtype(x.dtype).itemsize
    cost = pl.CostEstimate(
        flops=2 * B * HW * (C_in * C_hid + C_hid * C_out),
        transcendentals=B * HW * C_hid,
        bytes_accessed=(B * HW * (C_in + C_out)
                        + C_hid * C_in + C_out * C_hid + C_hid + C_out) * itemsize,
    )

    y_flat = pl.pallas_call(
        _mlp_kernel,
        out_shape=jax.ShapeDtypeStruct((B, C_out, HW), x.dtype),
        grid_spec=pltpu.PrefetchScalarGridSpec(
            num_scalar_prefetch=0,
            grid=grid,
            in_specs=[
                # batch dim squeezed (None) -> kernel sees clean 2-D tiles
                pl.BlockSpec((None, C_in, tHW), lambda b, j: (b, 0, j)),
                pl.BlockSpec((C_hid, C_in), lambda b, j: (0, 0)),
                pl.BlockSpec((C_hid, 1), lambda b, j: (0, 0)),
                pl.BlockSpec((C_out, C_hid), lambda b, j: (0, 0)),
                pl.BlockSpec((C_out, 1), lambda b, j: (0, 0)),
            ],
            out_specs=pl.BlockSpec((None, C_out, tHW), lambda b, j: (b, 0, j)),
        ),
        compiler_params=pltpu.CompilerParams(
            dimension_semantics=("parallel", "parallel"),
        ),
        cost_estimate=cost,
    )(x_flat, w1, b1_col, w2, b2_col)

    return y_flat.reshape(B, C_out, H, W)    # metadata-only reshape


if __name__ == "__main__":
    # Small shapes consistent with the module: B=2, in_features=4, H=W=16, hidden=32.
    B, C_in, H, W = 2, 4, 16, 16
    C_hid = 32
    C_out = C_in  # out_features defaults to in_features

    key = jax.random.PRNGKey(0)
    k1, k2, k3, k4, k5 = jax.random.split(key, 5)
    x = jax.random.normal(k1, (B, C_in, H, W), dtype=jnp.float32)
    w1 = jax.random.normal(k2, (C_hid, C_in), dtype=jnp.float32) * 0.2
    b1 = jax.random.normal(k3, (C_hid,), dtype=jnp.float32) * 0.1
    w2 = jax.random.normal(k4, (C_out, C_hid), dtype=jnp.float32) * 0.2
    b2 = jax.random.normal(k5, (C_out,), dtype=jnp.float32) * 0.1

    out = mlp_forward(x, w1, b1, w2, b2)
    out = jax.block_until_ready(out)

    # Reference: 1x1 conv == channel matmul per pixel; dropout(p=0) == identity.
    h_ref = jnp.einsum("oc,bchw->bohw", w1, x) + b1[None, :, None, None]
    h_ref = jax.nn.gelu(h_ref, approximate=True)
    y_ref = jnp.einsum("oc,bchw->bohw", w2, h_ref) + b2[None, :, None, None]

    assert out.shape == (B, C_out, H, W)
    assert out.dtype == x.dtype
    assert jnp.allclose(out, y_ref, atol=1e-3, rtol=1e-3), "mismatch vs reference"
    print("KERNEL_OK")
</pallas_src>

<mosaic_0001>
module attributes {stable_mosaic.version = 11 : i64} {
  func.func @_mlp_kernel(%arg0: i32, %arg1: i32, %arg2: memref<1x4x256xf32, #tpu.memory_space<vmem>>, %arg3: memref<32x4xf32, #tpu.memory_space<vmem>>, %arg4: memref<32x1xf32, #tpu.memory_space<vmem>>, %arg5: memref<4x32xf32, #tpu.memory_space<vmem>>, %arg6: memref<4x1xf32, #tpu.memory_space<vmem>>, %arg7: memref<1x4x256xf32, #tpu.memory_space<vmem>>) attributes {dimension_semantics = [#tpu.dimension_semantics<parallel>, #tpu.dimension_semantics<parallel>], iteration_bounds = array<i64: 2, 1>, scalar_prefetch = 0 : i64, scratch_operands = 0 : i64, tpu.core_type = #tpu.core_type<tc>, window_params = [{transform_indices = @transform_0, window_bounds = array<i64: 1, 4, 256>}, {pipeline_mode = #tpu.pipeline_mode<synchronous>, transform_indices = @transform_1, window_bounds = array<i64: 32, 4>}, {pipeline_mode = #tpu.pipeline_mode<synchronous>, transform_indices = @transform_2, window_bounds = array<i64: 32, 1>}, {pipeline_mode = #tpu.pipeline_mode<synchronous>, transform_indices = @transform_3, window_bounds = array<i64: 4, 32>}, {pipeline_mode = #tpu.pipeline_mode<synchronous>, transform_indices = @transform_4, window_bounds = array<i64: 4, 1>}, {transform_indices = @transform_5, window_bounds = array<i64: 1, 4, 256>}]} {
    %c0 = arith.constant 0 : index
    %c0_0 = arith.constant 0 : index
    %c0_1 = arith.constant 0 : index
    %0 = vector.load %arg2[%c0, %c0_0, %c0_1] : memref<1x4x256xf32, #tpu.memory_space<vmem>>, vector<1x4x256xf32>
    %1 = vector.shape_cast %0 : vector<1x4x256xf32> to vector<4x256xf32>
    %c0_2 = arith.constant 0 : index
    %c0_3 = arith.constant 0 : index
    %2 = vector.load %arg3[%c0_2, %c0_3] : memref<32x4xf32, #tpu.memory_space<vmem>>, vector<32x4xf32>
    %cst = arith.constant dense<0.000000e+00> : vector<32x256xf32>
    %3 = tpu.matmul %2, %1, %cst {dimension_numbers = #tpu.dot_dimension_numbers<[1], [0], [0], [1], [0, 0, 1, 1], [], []>} : vector<32x4xf32>, vector<4x256xf32>, vector<32x256xf32> -> vector<32x256xf32>
    %c0_4 = arith.constant 0 : index
    %c0_5 = arith.constant 0 : index
    %4 = vector.load %arg4[%c0_4, %c0_5] : memref<32x1xf32, #tpu.memory_space<vmem>>, vector<32x1xf32>
    %5 = vector.broadcast %4 : vector<32x1xf32> to vector<32x256xf32>
    %6 = arith.addf %3, %5 : vector<32x256xf32>
    %7 = arith.mulf %6, %6 : vector<32x256xf32>
    %8 = arith.mulf %6, %7 : vector<32x256xf32>
    %cst_6 = arith.constant 4.471500e-02 : f32
    %9 = vector.broadcast %cst_6 : f32 to vector<32x256xf32>
    %10 = arith.mulf %9, %8 : vector<32x256xf32>
    %11 = arith.addf %6, %10 : vector<32x256xf32>
    %cst_7 = arith.constant 0.797884583 : f32
    %12 = vector.broadcast %cst_7 : f32 to vector<32x256xf32>
    %13 = arith.mulf %12, %11 : vector<32x256xf32>
    %14 = math.tanh %13 : vector<32x256xf32>
    %cst_8 = arith.constant 1.000000e+00 : f32
    %15 = vector.broadcast %cst_8 : f32 to vector<32x256xf32>
    %16 = arith.addf %15, %14 : vector<32x256xf32>
    %cst_9 = arith.constant 5.000000e-01 : f32
    %17 = vector.broadcast %cst_9 : f32 to vector<32x256xf32>
    %18 = arith.mulf %17, %16 : vector<32x256xf32>
    %19 = arith.mulf %6, %18 : vector<32x256xf32>
    %c0_10 = arith.constant 0 : index
    %c0_11 = arith.constant 0 : index
    %20 = vector.load %arg5[%c0_10, %c0_11] : memref<4x32xf32, #tpu.memory_space<vmem>>, vector<4x32xf32>
    %cst_12 = arith.constant dense<0.000000e+00> : vector<4x256xf32>
    %21 = tpu.matmul %20, %19, %cst_12 {dimension_numbers = #tpu.dot_dimension_numbers<[1], [0], [0], [1], [0, 0, 1, 1], [], []>} : vector<4x32xf32>, vector<32x256xf32>, vector<4x256xf32> -> vector<4x256xf32>
    %c0_13 = arith.constant 0 : index
    %c0_14 = arith.constant 0 : index
    %22 = vector.load %arg6[%c0_13, %c0_14] : memref<4x1xf32, #tpu.memory_space<vmem>>, vector<4x1xf32>
    %23 = vector.broadcast %22 : vector<4x1xf32> to vector<4x256xf32>
    %24 = arith.addf %21, %23 : vector<4x256xf32>
    %c0_15 = arith.constant 0 : index
    %c0_16 = arith.constant 0 : index
    %c0_17 = arith.constant 0 : index
    %25 = vector.load %arg7[%c0_15, %c0_16, %c0_17] : memref<1x4x256xf32, #tpu.memory_space<vmem>>, vector<1x4x256xf32>
    %26 = vector.shape_cast %25 : vector<1x4x256xf32> to vector<4x256xf32>
    %27 = vector.shape_cast %24 : vector<4x256xf32> to vector<1x4x256xf32>
    tpu.vector_store %arg7[%c0_15, %c0_16, %c0_17], %27 {strides = array<i32>} : memref<1x4x256xf32, #tpu.memory_space<vmem>>, vector<1x4x256xf32>,
    return
  }
  func.func @transform_0(%arg0: i32, %arg1: i32) -> (i32, i32, i32) {
    %c0_i32 = arith.constant 0 : i32
    %c0_i32_0 = arith.constant 0 : i32
    return %arg0, %c0_i32, %arg1 : i32, i32, i32
  }
  func.func @transform_1(%arg0: i32, %arg1: i32) -> (i32, i32) {
    %c0_i32 = arith.constant 0 : i32
    %c0_i32_0 = arith.constant 0 : i32
    %c0_i32_1 = arith.constant 0 : i32
    return %c0_i32, %c0_i32_0 : i32, i32
  }
  func.func @transform_2(%arg0: i32, %arg1: i32) -> (i32, i32) {
    %c0_i32 = arith.constant 0 : i32
    %c0_i32_0 = arith.constant 0 : i32
    %c0_i32_1 = arith.constant 0 : i32
    return %c0_i32, %c0_i32_0 : i32, i32
  }
  func.func @transform_3(%arg0: i32, %arg1: i32) -> (i32, i32) {
    %c0_i32 = arith.constant 0 : i32
    %c0_i32_0 = arith.constant 0 : i32
    %c0_i32_1 = arith.constant 0 : i32
    return %c0_i32, %c0_i32_0 : i32, i32
  }
  func.func @transform_4(%arg0: i32, %arg1: i32) -> (i32, i32) {
    %c0_i32 = arith.constant 0 : i32
    %c0_i32_0 = arith.constant 0 : i32
    %c0_i32_1 = arith.constant 0 : i32
    return %c0_i32, %c0_i32_0 : i32, i32
  }
  func.func @transform_5(%arg0: i32, %arg1: i32) -> (i32, i32, i32) {
    %c0_i32 = arith.constant 0 : i32
    %c0_i32_0 = arith.constant 0 : i32
    return %arg0, %c0_i32, %arg1 : i32, i32, i32
  }
}

</mosaic_0001>

<bundles_post_ra>
// kernel: tpu_custom_call.1
= control target key start
LH: loop header
LB: loop body
LE: loop exit
PB: predicated region body
PF: predicated region fallthrough
CT: control target
= control target key end

     0   :  { %10 = vsyncpa [#allocation3], 0  ;;  %s984_s0 = inlined_call_operand.vmem [shape: f32[2,4,256], index: 0, kind: input, shape index: {}]   ;;  %s985_s1 = inlined_call_operand.vmem [shape: f32[32,4], index: 1, kind: input, shape index: {}]   ;;  %s986_s2 = inlined_call_operand.vmem [shape: f32[32,1], index: 2, kind: input, shape index: {}]   ;;  %s987_s3 = inlined_call_operand.vmem [shape: f32[4,32], index: 3, kind: input, shape index: {}]   ;;  %s988_s4 = inlined_call_operand.vmem [shape: f32[4,1], index: 4, kind: input, shape index: {}]   ;;  %s989_s5 = inlined_call_operand.hbm [shape: f32[2,4,256], index: 5, kind: output, shape index: {}]  }
   0x1   :  { %12 = vsyncpa [#allocation3 + $0x1], 0  ;;  %s802_s18 = smov 0   ;;  %s804_s19 = smov 0  }
   0x2   :  { %s806_s20 = smov 0   ;;  %s808_s21 = smov 0  }
   0x3   :  { %s810_s22 = smov 0   ;;  %s812_s23 = smov 0  }
   0x4 LB: > { %s587_s24 = sadd.s32 4294967295, %s769_s23   ;;  %s588_s25 = sadd.s32 4294967294, %s769_s23   ;;  %s769_s23 = sphi %s812_s23, %s18_s23   ;;  %s765_s22 = sphi %s810_s22, %s996_s22   ;;  %s761_s21 = sphi %s808_s21, %s995_s21   ;;  %s757_s20 = sphi %s806_s20, %s994_s20   ;;  %s753_s19 = sphi %s804_s19, %s993_s19   ;;  %s749_s18 = sphi %s802_s18, %s992_s18  }
   0x5   : > { %s30_s26 = sadd.s32 1, %s765_s22  ;;  %s151_s27 = sadd.s32 1, %s757_s20 }
   0x6   : > { %p32_p0 = scmp.ge.s32.totalorder %s30_s26, 2  ;;  %p161_p1 = scmp.ne.s32.totalorder %s757_s20, %s753_s19 }
   0x7   : > { %p162_p2 = scmp.eq.s32.totalorder %s587_s24, 1  ;;  %p167_p3 = scmp.ne.s32.totalorder %s753_s19, %s749_s18 }
   0x8   : > { %s998_s26 = smov (%p32_p0, %s30_s26), 0  ;;  %p168_p5 = scmp.eq.s32.totalorder %s588_s25, 1 }
   0x9   : > { %p842_p4 = por %p162_p2, %p161_p1  ;;  %s146_s29 = ssub.s32 %s765_s22, %s998_s26 }
   0xa   : > { %p591_p6 = scmp.ge.s32.totalorder %s769_s23, 1  ;;  %p149_p7 = scmp.eq.s32.totalorder %s146_s29, 0 }
   0xb   : > { %p849_p8 = por %p168_p5, %p167_p3  ;;  %p211_p9 = scmp.lt.s32.totalorder %s769_s23, 3 }
   0xc   : > { %s855_s6 = scalar_select %p149_p7, %s757_s20, %s151_s27  }
   0xd   : > { %p212_p10 = pnand %p591_p6, %p211_p9 }
   0xe   : > { %p244_p11 = scmp.lt.s32.totalorder (!%p212_p10), %s761_s21, 1  ;;  %s240_s17 = sand.u32 (!%p212_p10), 1, %s753_s19  }
   0xf   : > { %215 = sbr.rel (%p212_p10) target bundleno = 348 (0x15c), region = 40  ;;  %s592_s24 = sshll.u32 (!%p212_p10), %s240_s17, 3 }
  0x10   : > { %s613_s25 = sshll.u32 (!%p212_p10), %s761_s21, 3  ;;  %s242_s8 = scalar_lea.vmem (!%p212_p10), [#allocation2], %s592_s24 }
  0x11   : > { %s506_s7 = scalar_lea.hbm (!%p212_p10), %s989_s5, %s613_s25  ;;  %s508_s9 = sshll.u32 (!%p212_p10), %s242_s8, 4  ;;  %s509_s9 = int_to_ptr.vmem [resolvable:$true] %s508_s9 }
  0x12   : > { %s510_s10 = sshll.u32 (!%p212_p10), %s506_s7, 4  ;;  %s511_s10 = int_to_ptr.hbm [resolvable:$true] %s510_s10 }
  0x14   : > { %v771_v0 = vmov 0   ;;  %v260_v1 = vld [vmem:[%s986_s2 + $0x8] sm:$0xff]  ;;  %v262_v2 = vld [vmem:[%s986_s2 + $0x18] sm:$0xff]  ;;  %s245_s11 = scalar_select %p244_p11, %s761_s21, 1  ;;  %v259_v4 = vld [vmem:[%s986_s2] sm:$0xff]  ;;  %vm300_vm0 = vcmask 1043456  }
  0x15   : > { %673 = vset.pattern.permute.xlu1 %v771_v0  ;;  %672 = vset.pattern.permute.xlu0 %v771_v0  ;;  %v261_v5 = vld [vmem:[%s986_s2 + $0x10] sm:$0xff]  ;;  %v255_v6 = vld [vmem:[%s985_s1] sm:$0xff]  ;;  %vm287_vm1 = vcmask 31744   ;;  %v258_v7 = vld [vmem:[%s985_s1 + $0x18] sm:$0xff]  ;;  %vm442_vm2 = vcmask 261120   ;;  %s493_s21 = scalar_lea.sflag [#allocation3], %s240_s17 }
  0x16   : > { %270 = vperm.xlu1 %673, %v260_v1   ;;  %280 = vperm.xlu0 %672, %v262_v2   ;;  %s612_s12 = sshll.u32 %s245_s11, 3  ;;  %v256_v10 = vld [vmem:[%s985_s1 + $0x8] sm:$0xff]  ;;  %v257_v11 = vld [vmem:[%s985_s1 + $0x10] sm:$0xff]  ;;  %v436_v49 = vld [vmem:[%s988_s4] sm:$0xf]  ;;  %s705_s11 = sshra.s32 %s511_s10, 4  ;;  %s706_s11 = int_to_ptr.hbm [resolvable:$true] %s705_s11 }
  0x17   : > { %674 = vset.pattern.permute.xlu2 %v771_v0  ;;  %s251_s15 = scalar_lea.vmem %s984_s0, %s612_s12  ;;  %s707_s12 = scalar_lea.hbm %s706_s11, 8 }
  0x18   : > { %v254_v3 = vld [vmem:[%s251_s15] sm:$0xff]  ;;  %439 = vperm.xlu2 %674, %v436_v49   ;;  %p708_p12 = scmp.ne.s32.totalorder %s706_s11, %s707_s12  ;;  %s711_s15 = scalar_lea.hbm %s989_s5, 16 }
  0x19   : > { %284 = vst [vmem:[#allocation1] ss:$2 sm:$0xff] %v254_v3  ;;  %p712_p1 = scmp.lt.s32.totalorder %s706_s11, %s989_s5  ;;  %p713_p2 = scmp.lt.s32.totalorder %s711_s15, %s707_s12 }
  0x1a   : > { %p709_p13 = pnand %p708_p12, %p842_p4 }
  0x1b   : > { %p714_p3 = por %p713_p2, %p712_p1 }
  0x1c   : > { %p710_p0 = pneg %p709_p13 }
  0x1e   : > { %265 = vperm.xlu1 %673, %v259_v4   ;;  %275 = vperm.xlu0 %672, %v261_v5   ;;  %p715_p5 = pnand %p714_p3, %p710_p0 }
  0x20   : > { %v285_v8 = vld.sshfl [vmem:[#allocation1] sm:$0xff pattern:$0x75316420]  ;;  %v286_v9 = vld.sshfl [vmem:[#allocation1 + $0x8] sm:$0xff pattern:$0x75316420] }
  0x21   : > { %595 = vmatpush.msk.msra.mxu0 %vm300_vm0, %v285_v8  ;;  %614 = vmatpush.msk.msra.mxu2 %vm300_vm0, %v285_v8 }
  0x22   : > { %600 = vmatpush.msk.msra.mxu1 %vm300_vm0, %v286_v9  ;;  %615 = vmatpush.msk.msra.mxu3 %vm300_vm0, %v286_v9 }
  0x23   : > { %596 = vmatmul.msk.f32.vlgmr.msra.gmra.mxu0 %vm287_vm1, %v255_v6  ;;  %599 = vmatmul.msk.f32.vlgmr.msra.gmra.mxu2 %vm287_vm1, %v258_v7 }
  0x24   : > { %601 = vmatmul.msk.f32.vlgmr.msra.gmra.mxu1 %vm287_vm1, %v255_v6  ;;  %604 = vmatmul.msk.f32.vlgmr.msra.gmra.mxu3 %vm287_vm1, %v258_v7 }
  0x2b   : > { %597 = vmatmul.msk.f32.gmra.mxu0 %vm287_vm1, %v256_v10 }
  0x2c   : > { %602 = vmatmul.msk.f32.gmra.mxu1 %vm287_vm1, %v256_v10 }
  0x33   : > { %598 = vmatmul.msk.f32.gmra.mxu0 %vm287_vm1, %v257_v11 }
  0x34   : > { %603 = vmatmul.msk.f32.gmra.mxu1 %vm287_vm1, %v257_v11 }
  0x88   : > { %v271_v12 = vpop.permute.xlu1 %270  ;;  %v281_v18 = vpop.permute.xlu0 %280 }
  0x90   : > { %v266_v13 = vpop.permute.xlu1 %265  ;;  %v276_v44 = vpop.permute.xlu0 %275 }
  0xa0   : > { %v322_v14 = vpop.f32.mrf.mxu0 }
  0xa1   : > { %v351_v15 = vpop.f32.mrf.mxu1  ;;  %v898_v16 = vadd.f32 %v322_v14, %v266_v13 }
  0xa2   : > { %v900_v17 = vadd.f32 %v351_v15, %v266_v13 }
  0xa3   : > { %v363_v20 = vmul.f32 %v898_v16, %v898_v16 }
  0xa4   : > { %v364_v23 = vmul.f32 %v900_v17, %v900_v17 }
  0xa5   : > { %v371_v31 = vmul.f32 %v363_v20, %v898_v16 }
  0xa6   : > { %v331_v19 = vpop.f32.mrf.mxu2  ;;  %v372_v34 = vmul.f32 %v364_v23, %v900_v17 }
  0xa7   : > { %v904_v21 = vadd.f32 %v331_v19, %v281_v18  ;;  %v360_v22 = vpop.f32.mrf.mxu3  ;;  %v379_v43 = vmul.f32 0.044715, %v371_v31 }
  0xa8   : > { %v908_v24 = vadd.f32 %v360_v22, %v281_v18  ;;  %v325_v25 = vpop.f32.mrf.mxu0  ;;  %v380_v48 = vmul.f32 0.044715, %v372_v34 }
  0xa9   : > { %v369_v26 = vmul.f32 %v904_v21, %v904_v21  ;;  %v912_v27 = vadd.f32 %v325_v25, %v271_v12  ;;  %v354_v28 = vpop.f32.mrf.mxu1  ;;  %v387_v58 = vadd.f32 %v379_v43, %v898_v16 }
  0xaa   : > { %v370_v29 = vmul.f32 %v908_v24, %v908_v24  ;;  %v916_v30 = vadd.f32 %v354_v28, %v271_v12  ;;  %v388_v60 = vadd.f32 %v380_v48, %v900_v17 }
  0xab   : > { %v377_v32 = vmul.f32 %v369_v26, %v904_v21  ;;  %v365_v33 = vmul.f32 %v912_v27, %v912_v27  ;;  %v395_v2 = vmul.f32 0.7978846, %v387_v58 }
  0xac   : > { %v378_v35 = vmul.f32 %v370_v29, %v908_v24  ;;  %v366_v36 = vmul.f32 %v916_v30, %v916_v30  ;;  %v396_v4 = vmul.f32 0.7978846, %v388_v60 }
  0xad   : > { %v373_v37 = vmul.f32 %v365_v33, %v912_v27  ;;  %v385_v38 = vmul.f32 0.044715, %v377_v32 }
  0xae   : > { %v374_v39 = vmul.f32 %v366_v36, %v916_v30  ;;  %v386_v40 = vmul.f32 0.044715, %v378_v35 }
  0xaf   : > { %v393_v41 = vadd.f32 %v385_v38, %v904_v21  ;;  %v381_v42 = vmul.f32 0.044715, %v373_v37 }
  0xb0   : > { %v328_v45 = vpop.f32.mrf.mxu0  ;;  %v394_v46 = vadd.f32 %v386_v40, %v908_v24  ;;  %v382_v47 = vmul.f32 0.044715, %v374_v39 }
  0xb1   : > { %v329_v50 = vadd.f32 %v328_v45, %v276_v44  ;;  %v357_v51 = vpop.f32.mrf.mxu1  ;;  %v401_v52 = vmul.f32 0.7978846, %v393_v41  ;;  %v389_v53 = vadd.f32 %v381_v42, %v912_v27 }
  0xb2   : > { %v358_v54 = vadd.f32 %v357_v51, %v276_v44  ;;  %v402_v55 = vmul.f32 0.7978846, %v394_v46  ;;  %v390_v56 = vadd.f32 %v382_v47, %v916_v30  ;;  %v435_v44 = vld [vmem:[%s987_s3] sm:$0xf] }
  0xb3   : > { %v367_v57 = vmul.f32 %v329_v50, %v329_v50  ;;  %675 = vtanh.f32 %v401_v52  ;;  %v397_v62 = vmul.f32 0.7978846, %v389_v53 }
  0xb4   : > { %v368_v59 = vmul.f32 %v358_v54, %v358_v54  ;;  %677 = vtanh.f32 %v402_v55  ;;  %v398_v0 = vmul.f32 0.7978846, %v390_v56 }
  0xb5   : > { %v375_v61 = vmul.f32 %v367_v57, %v329_v50  ;;  %679 = vtanh.f32 %v397_v62 }
  0xb6   : > { %v376_v63 = vmul.f32 %v368_v59, %v358_v54  ;;  %681 = vtanh.f32 %v398_v0 }
  0xb7   : > { %v383_v1 = vmul.f32 0.044715, %v375_v61  ;;  %683 = vtanh.f32 %v395_v2 }
  0xb8   : > { %v384_v3 = vmul.f32 0.044715, %v376_v63  ;;  %685 = vtanh.f32 %v396_v4 }
  0xb9   : > { %v676_v5 = vpop.eup %675  ;;  %v391_v6 = vadd.f32 %v383_v1, %v329_v50 }
  0xba   : > { %v678_v7 = vpop.eup %677  ;;  %v417_v8 = vadd.f32 1.0, %v676_v5  ;;  %v392_v9 = vadd.f32 %v384_v3, %v358_v54 }
  0xbb   : > { %v418_v10 = vadd.f32 1.0, %v678_v7  ;;  %v399_v11 = vmul.f32 0.7978846, %v391_v6  ;;  %v680_v18 = vpop.eup %679 }
  0xbc   : > { %v425_v12 = vmul.f32 0.5, %v417_v8  ;;  %v400_v13 = vmul.f32 0.7978846, %v392_v9  ;;  %v682_v20 = vpop.eup %681  ;;  %v413_v25 = vadd.f32 1.0, %v680_v18 }
  0xbd   : > { %v426_v14 = vmul.f32 0.5, %v418_v10  ;;  %687 = vtanh.f32 %v399_v11  ;;  %v684_v22 = vpop.eup %683  ;;  %v414_v28 = vadd.f32 1.0, %v682_v20 }
  0xbe   : > { %v433_v15 = vmul.f32 %v425_v12, %v904_v21  ;;  %689 = vtanh.f32 %v400_v13  ;;  %v686_v23 = vpop.eup %685  ;;  %v411_v32 = vadd.f32 1.0, %v684_v22  ;;  %v421_v36 = vmul.f32 0.5, %v413_v25 }
  0xbf   : > { %v434_v19 = vmul.f32 %v426_v14, %v908_v24  ;;  %v412_v34 = vadd.f32 1.0, %v686_v23  ;;  %v422_v37 = vmul.f32 0.5, %v414_v28 }
  0xc0   : > { %458 = vmatpush.msrb.mxu2 %v433_v15  ;;  %v419_v39 = vmul.f32 0.5, %v411_v32  ;;  %v429_v41 = vmul.f32 %v421_v36, %v912_v27  ;;  %v440_v27 = vpop.permute.xlu2 %439 }
  0xc1   : > { %478 = vmatpush.msrb.mxu3 %v434_v19  ;;  %v420_v40 = vmul.f32 0.5, %v412_v34  ;;  %v430_v42 = vmul.f32 %v422_v37, %v916_v30 }
  0xc2   : > { %v427_v43 = vmul.f32 %v419_v39, %v898_v16 }
  0xc3   : > { %v688_v26 = vpop.eup %687  ;;  %v428_v45 = vmul.f32 %v420_v40, %v900_v17 }
  0xc4   : > { %v690_v29 = vpop.eup %689  ;;  %v415_v31 = vadd.f32 1.0, %v688_v26 }
  0xc5   : > { %v416_v33 = vadd.f32 1.0, %v690_v29 }
  0xc6   : > { %v423_v35 = vmul.f32 0.5, %v415_v31 }
  0xc7   : > { %v424_v21 = vmul.f32 0.5, %v416_v33 }
  0xc8   : > { %v431_v38 = vmul.f32 %v423_v35, %v329_v50 }
  0xc9   : > { %v432_v24 = vmul.f32 %v424_v21, %v358_v54 }
  0xca   : > { %459 = vmatpush.msrb.mxu2 %v431_v38 }
  0xcb   : > { %479 = vmatpush.msrb.mxu3 %v432_v24 }
  0xcc   : > { %460 = vmatpush.msrb.mxu2 %v429_v41 }
  0xcd   : > { %480 = vmatpush.msrb.mxu3 %v430_v42 }
  0xce   : > { %461 = vmatpush.msrb.mxu2 %v427_v43 }
  0xcf   : > { %481 = vmatpush.msrb.mxu3 %v428_v45  ;;  %605 = vmatmul.msk.f32.vlgmr.msrb.gmra.mxu2 %vm442_vm2, %v435_v44 }
  0xd0   : > { %606 = vmatmul.msk.f32.vlgmr.msrb.gmra.mxu3 %vm442_vm2, %v435_v44 }
 0x152   : > { %v463_v30 = vpop.f32.mrf.mxu2 }
 0x153   : > { %v483_v16 = vpop.f32.mrf.mxu3  ;;  %v464_v47 = vadd.f32 %v463_v30, %v440_v27 }
 0x154   : > { %v484_v46 = vadd.f32 %v483_v16, %v440_v27 }
 0x156   : > { %v488_v17 = vrot.slane %v484_v46, 4 }
 0x158   : > { %v489_v48 = vsel %vm300_vm0, %v464_v47, %v488_v17 }
 0x159   : > { %491 = vst [vmem:[%s242_s8] sm:$0xff] %v489_v48 }
 0x15a   : > { %718 = shalt.err (!%p715_p5)
}
 0x15b   : > { %616 = dma.vmem_to_hbm [thread:$0]  (%p842_p4), %s509_s9, 128, %s511_s10, %s493_s21  }
 0x15c PF: > { %p622_p6 = scmp.ge.s32.totalorder %s769_s23, 2  ;;  %s522_s17 = sand.u32 1, %s749_s18  }
 0x15d   : > { %s523_s25 = scalar_lea.sflag [#allocation3], %s522_s17 }
 0x15e   : > { %p619_p7 = pnand %p622_p6, %p849_p8 }
 0x160   : > { %p620_p9 = pneg %p619_p7 }
 0x162   : > { %744 = dma.done.wait (%p620_p9), %s523_s25, 128  }
 0x163   : > { %746 = vsyncadd (%p620_p9), %s523_s25, 4294967168  ;;  %s18_s23 = sadd.s32 1, %s769_s23   ;;  %s992_s18 = smov %s753_s19 }
 0x164   : > { %p15_p10 = scmp.ge.s32.totalorder %s18_s23, 4   ;;  %s993_s19 = smov %s757_s20 }
 0x165   : > { %s994_s20 = smov %s855_s6  ;;  %s995_s21 = smov %s765_s22 }
 0x166   : > { %s996_s22 = smov %s998_s26  ;;  %17 = sbr.rel (!%p15_p10) target bundleno = 4 (0x4), region = 75 }
 0x16b   :  { %529 = vsyncpa [#allocation3], 1 }
 0x16c   :  { %531 = vsyncpa [#allocation3 + $0x1], 1 }

</bundles_post_ra>
